<compile_context>
chip_gen: v5e
topology: v5e:2x2
jax: 0.10.0
libtpu: 0.0.40
codegen_flags: <defaults>
</compile_context>

<pallas_src>
import functools

import jax
import jax.numpy as jnp
from jax.experimental import pallas as pl
from jax.experimental.pallas import tpu as pltpu

HIDDEN = 256


def d_mlp_kernel(x_ref, w1_ref, b1_ref, w2_ref, b2_ref, w3_ref, b3_ref, o_ref):
    """Fused 3-layer MLP discriminator for one batch tile."""
    # Layer 1: Linear(in_size, 256) on the MXU (bf16 operands, f32 accum).
    h = jnp.dot(x_ref[...], w1_ref[...], preferred_element_type=jnp.float32)
    h += b1_ref[...]
    h = jnp.maximum(h, 0.2 * h)            # LeakyReLU(0.2): single vmax (VPU, f32)
    # Dropout(p=0.5): identity in eval mode.

    # Layer 2: Linear(256, 256) on the MXU.
    h = jnp.dot(h.astype(jnp.bfloat16), w2_ref[...],
                preferred_element_type=jnp.float32)
    h += b2_ref[...]
    h = jnp.maximum(h, 0.2 * h)            # LeakyReLU(0.2)
    # Dropout(p=0.5): identity in eval mode.

    # Layer 3: Linear(256, 1), computed lane-dense on the MXU:
    # (1, 256) x (tb, 256)^T -> (1, tb).  This makes the output store a dense
    # (1, tb) row (no masked per-row vst, no XLU lane reduction).
    z = jax.lax.dot_general(
        w3_ref[...], h.astype(jnp.bfloat16),
        dimension_numbers=(((1,), (1,)), ((), ())),
        preferred_element_type=jnp.float32)
    z = z + b3_ref[0, 0]                   # scalar bias from SMEM

    # Sigmoid: exp + approximate reciprocal, both on the EUP.
    o_ref[...] = pl.reciprocal(1.0 + jnp.exp(-z), approx=True)


@functools.partial(jax.jit, static_argnames=("block_b",))
def d_forward(x, params, block_b=1024):
    """Forward pass of D. x: (B, C, H, W) or (B, in_size). Returns (B,) f32.

    x should be emitted bf16 by the producer (the kernel is HBM-bound on this
    stream); any other dtype is cast here as a fallback.
    """
    b = x.shape[0]
    xf = x.reshape(b, -1)
    if xf.dtype != jnp.bfloat16:
        # Fallback only — ideally the upstream encoder already emits bf16.
        xf = xf.astype(jnp.bfloat16)
    in_size = xf.shape[1]
    w1, b1, w2, b2, w3, b3 = params

    # Batch tiling.  No jnp.pad: tiny batches use one whole-batch tile
    # (block == full dims, no alignment constraint, minimal fixed cost);
    # large batches use a 128-multiple tile (lane-dense output) and Pallas
    # masks the ragged last block.  n_tiles >= 2 lets "parallel" shard the
    # grid across both v7x TensorCores.
    if b <= block_b:
        tb = b
    else:
        tb = block_b
        # v7x guard: only 64 MiB physical VMEM (32 MiB scoped default); keep
        # the (up to triple-buffered) bf16 x tiles well under it.
        while tb > 128 and 3 * tb * in_size * 2 > (24 << 20):
            tb //= 2
    n_tiles = pl.cdiv(b, tb)
    total_rows = n_tiles * tb

    flops = 2 * total_rows * (in_size * HIDDEN + HIDDEN * HIDDEN + HIDDEN)
    bytes_accessed = (
        b * in_size * 2                                          # x (bf16), no pad copy
        + (in_size * HIDDEN + HIDDEN * HIDDEN + HIDDEN) * 2      # bf16 weights
        + 2 * HIDDEN * 4 + 4                                     # f32 biases + b3
        + total_rows * 4                                         # output (f32)
    )

    # Deeper x prefetch only when the grid is long enough to hide DMA latency.
    if n_tiles > 2:
        x_spec = pl.BlockSpec((tb, in_size), lambda i: (i, 0),
                              pipeline_mode=pl.Buffered(3))
    else:
        x_spec = pl.BlockSpec((tb, in_size), lambda i: (i, 0))

    out = pl.pallas_call(
        d_mlp_kernel,
        out_shape=jax.ShapeDtypeStruct((n_tiles, tb), jnp.float32),
        grid_spec=pltpu.PrefetchScalarGridSpec(
            num_scalar_prefetch=0,
            grid=(n_tiles,),
            in_specs=[
                x_spec,                                               # x tile (bf16)
                pl.BlockSpec((in_size, HIDDEN), lambda i: (0, 0)),    # w1 (bf16)
                pl.BlockSpec((1, HIDDEN), lambda i: (0, 0)),          # b1 (f32)
                pl.BlockSpec((HIDDEN, HIDDEN), lambda i: (0, 0)),     # w2 (bf16)
                pl.BlockSpec((1, HIDDEN), lambda i: (0, 0)),          # b2 (f32)
                pl.BlockSpec((1, HIDDEN), lambda i: (0, 0)),          # w3 row (bf16)
                pl.BlockSpec(memory_space=pltpu.MemorySpace.SMEM),    # b3 scalar
            ],
            out_specs=pl.BlockSpec((1, tb), lambda i: (i, 0)),        # lane-dense row
        ),
        compiler_params=pltpu.CompilerParams(
            dimension_semantics=("parallel",),
        ),
        cost_estimate=pl.CostEstimate(
            flops=flops,
            transcendentals=total_rows,
            bytes_accessed=bytes_accessed,
        ),
    )(xf, w1, b1, w2, b2, w3, b3)

    return out.reshape(-1)[:b]


def init_params(key, in_size):
    """Init mirroring nn.Linear's U(-1/sqrt(fan_in), 1/sqrt(fan_in)).

    MXU-side weights (w1, w2, w3) are stored bf16; biases stay f32 and b3 is
    a (1, 1) scalar destined for SMEM.
    """
    dims = [(in_size, HIDDEN), (HIDDEN, HIDDEN), (HIDDEN, 1)]
    raw = []
    for (fan_in, fan_out) in dims:
        key, kw, kb = jax.random.split(key, 3)
        bound = 1.0 / jnp.sqrt(jnp.float32(fan_in))
        w = jax.random.uniform(kw, (fan_in, fan_out), jnp.float32, -bound, bound)
        bvec = jax.random.uniform(kb, (1, fan_out), jnp.float32, -bound, bound)
        raw += [w, bvec]
    w1, b1, w2, b2, w3, b3 = raw
    return (
        w1.astype(jnp.bfloat16), b1,
        w2.astype(jnp.bfloat16), b2,
        w3.reshape(1, HIDDEN).astype(jnp.bfloat16), b3.reshape(1, 1),
    )


def d_forward_ref(x, params):
    """Pure-JAX reference mirroring the kernel's bf16-matmul/f32-accum math."""
    b = x.shape[0]
    w1, b1, w2, b2, w3, b3 = params
    h = x.reshape(b, -1).astype(jnp.bfloat16)
    h = jnp.dot(h, w1, preferred_element_type=jnp.float32) + b1
    h = jnp.maximum(h, 0.2 * h)
    h = jnp.dot(h.astype(jnp.bfloat16), w2, preferred_element_type=jnp.float32) + b2
    h = jnp.maximum(h, 0.2 * h)
    z = jnp.dot(h.astype(jnp.bfloat16), w3.T, preferred_element_type=jnp.float32) + b3
    return jax.nn.sigmoid(z).reshape(-1)


if __name__ == "__main__":
    # Small shapes consistent with the module: (B, C, H, W) flattened to
    # (B, in_size).  in_size = 32*4*4 = 512.
    B, C, H, W = 2, 32, 4, 4
    in_size = C * H * W

    key = jax.random.PRNGKey(0)
    key, kx = jax.random.split(key)
    # Producer emits bf16 directly — the kernel's dominant HBM stream.
    x = jax.random.normal(kx, (B, C, H, W), jnp.bfloat16)

    params = init_params(key, in_size)

    out = jax.block_until_ready(d_forward(x, params))
    ref = d_forward_ref(x, params)

    assert out.shape == (B,), out.shape
    assert jnp.all(jnp.isfinite(out))
    # bf16 matmuls + EUP approximate reciprocal -> slightly looser tolerance.
    assert jnp.allclose(out, ref.astype(out.dtype), atol=5e-3, rtol=5e-3), (out, ref)

    print("KERNEL_OK")
</pallas_src>

<mosaic_0001>
module attributes {stable_mosaic.version = 11 : i64} {
  func.func @d_mlp_kernel(%arg0: i32, %arg1: memref<2x512xbf16, #tpu.memory_space<vmem>>, %arg2: memref<512x256xbf16, #tpu.memory_space<vmem>>, %arg3: memref<1x256xf32, #tpu.memory_space<vmem>>, %arg4: memref<256x256xbf16, #tpu.memory_space<vmem>>, %arg5: memref<1x256xf32, #tpu.memory_space<vmem>>, %arg6: memref<1x256xbf16, #tpu.memory_space<vmem>>, %arg7: memref<1x1xf32, #tpu.memory_space<smem>>, %arg8: memref<1x2xf32, #tpu.memory_space<vmem>>) attributes {dimension_semantics = [#tpu.dimension_semantics<parallel>], iteration_bounds = array<i64: 1>, scalar_prefetch = 0 : i64, scratch_operands = 0 : i64, tpu.core_type = #tpu.core_type<tc>, window_params = [{transform_indices = @transform_0, window_bounds = array<i64: 2, 512>}, {pipeline_mode = #tpu.pipeline_mode<synchronous>, transform_indices = @transform_1, window_bounds = array<i64: 512, 256>}, {pipeline_mode = #tpu.pipeline_mode<synchronous>, transform_indices = @transform_2, window_bounds = array<i64: 1, 256>}, {pipeline_mode = #tpu.pipeline_mode<synchronous>, transform_indices = @transform_3, window_bounds = array<i64: 256, 256>}, {pipeline_mode = #tpu.pipeline_mode<synchronous>, transform_indices = @transform_4, window_bounds = array<i64: 1, 256>}, {pipeline_mode = #tpu.pipeline_mode<synchronous>, transform_indices = @transform_5, window_bounds = array<i64: 1, 256>}, {transform_indices = @transform_6, window_bounds = array<i64: 1, 1>}, {transform_indices = @transform_7, window_bounds = array<i64: 1, 2>}]} {
    %c0 = arith.constant 0 : index
    %c0_0 = arith.constant 0 : index
    %0 = vector.load %arg1[%c0, %c0_0] : memref<2x512xbf16, #tpu.memory_space<vmem>>, vector<2x512xbf16>
    %c0_1 = arith.constant 0 : index
    %c0_2 = arith.constant 0 : index
    %1 = vector.load %arg2[%c0_1, %c0_2] : memref<512x256xbf16, #tpu.memory_space<vmem>>, vector<512x256xbf16>
    %cst = arith.constant dense<0.000000e+00> : vector<2x256xf32>
    %2 = tpu.matmul %0, %1, %cst {dimension_numbers = #tpu.dot_dimension_numbers<[1], [0], [0], [1], [0, 0, 1, 1], [], []>} : vector<2x512xbf16>, vector<512x256xbf16>, vector<2x256xf32> -> vector<2x256xf32>
    %c0_3 = arith.constant 0 : index
    %c0_4 = arith.constant 0 : index
    %3 = vector.load %arg3[%c0_3, %c0_4] : memref<1x256xf32, #tpu.memory_space<vmem>>, vector<1x256xf32>
    %4 = vector.broadcast %3 : vector<1x256xf32> to vector<2x256xf32>
    %5 = arith.addf %2, %4 : vector<2x256xf32>
    %cst_5 = arith.constant 2.000000e-01 : f32
    %6 = vector.broadcast %cst_5 : f32 to vector<2x256xf32>
    %7 = arith.mulf %6, %5 : vector<2x256xf32>
    %8 = arith.maximumf %5, %7 : vector<2x256xf32>
    %9 = arith.truncf %8 : vector<2x256xf32> to vector<2x256xbf16>
    %c0_6 = arith.constant 0 : index
    %c0_7 = arith.constant 0 : index
    %10 = vector.load %arg4[%c0_6, %c0_7] : memref<256x256xbf16, #tpu.memory_space<vmem>>, vector<256x256xbf16>
    %cst_8 = arith.constant dense<0.000000e+00> : vector<2x256xf32>
    %11 = tpu.matmul %9, %10, %cst_8 {dimension_numbers = #tpu.dot_dimension_numbers<[1], [0], [0], [1], [0, 0, 1, 1], [], []>} : vector<2x256xbf16>, vector<256x256xbf16>, vector<2x256xf32> -> vector<2x256xf32>
    %c0_9 = arith.constant 0 : index
    %c0_10 = arith.constant 0 : index
    %12 = vector.load %arg5[%c0_9, %c0_10] : memref<1x256xf32, #tpu.memory_space<vmem>>, vector<1x256xf32>
    %13 = vector.broadcast %12 : vector<1x256xf32> to vector<2x256xf32>
    %14 = arith.addf %11, %13 : vector<2x256xf32>
    %cst_11 = arith.constant 2.000000e-01 : f32
    %15 = vector.broadcast %cst_11 : f32 to vector<2x256xf32>
    %16 = arith.mulf %15, %14 : vector<2x256xf32>
    %17 = arith.maximumf %14, %16 : vector<2x256xf32>
    %c0_12 = arith.constant 0 : index
    %c0_13 = arith.constant 0 : index
    %18 = vector.load %arg6[%c0_12, %c0_13] : memref<1x256xbf16, #tpu.memory_space<vmem>>, vector<1x256xbf16>
    %19 = arith.truncf %17 : vector<2x256xf32> to vector<2x256xbf16>
    %cst_14 = arith.constant dense<0.000000e+00> : vector<1x2xf32>
    %20 = tpu.matmul %18, %19, %cst_14 {dimension_numbers = #tpu.dot_dimension_numbers<[1], [1], [0], [0], [0, 0, 1, 0], [], []>} : vector<1x256xbf16>, vector<2x256xbf16>, vector<1x2xf32> -> vector<1x2xf32>
    %c0_15 = arith.constant 0 : index
    %c0_16 = arith.constant 0 : index
    %21 = memref.load %arg7[%c0_15, %c0_16] : memref<1x1xf32, #tpu.memory_space<smem>>
    %22 = vector.broadcast %21 : f32 to vector<1x2xf32>
    %23 = arith.addf %20, %22 : vector<1x2xf32>
    %cst_17 = arith.constant 0.000000e+00 : f32
    %24 = vector.broadcast %cst_17 : f32 to vector<1x2xf32>
    %25 = arith.subf %24, %23 : vector<1x2xf32>
    %26 = math.exp %25 : vector<1x2xf32>
    %cst_18 = arith.constant 1.000000e+00 : f32
    %27 = vector.broadcast %cst_18 : f32 to vector<1x2xf32>
    %28 = arith.addf %27, %26 : vector<1x2xf32>
    %29 = tpu.reciprocal %28 {approx = true} : vector<1x2xf32> -> vector<1x2xf32>
    %c0_19 = arith.constant 0 : index
    %c0_20 = arith.constant 0 : index
    %30 = vector.load %arg8[%c0_19, %c0_20] : memref<1x2xf32, #tpu.memory_space<vmem>>, vector<1x2xf32>
    tpu.vector_store %arg8[%c0_19, %c0_20], %29 {strides = array<i32>} : memref<1x2xf32, #tpu.memory_space<vmem>>, vector<1x2xf32>,
    return
  }
  func.func @transform_0(%arg0: i32) -> (i32, i32) {
    %c0_i32 = arith.constant 0 : i32
    %c0_i32_0 = arith.constant 0 : i32
    return %arg0, %c0_i32 : i32, i32
  }
  func.func @transform_1(%arg0: i32) -> (i32, i32) {
    %c0_i32 = arith.constant 0 : i32
    %c0_i32_0 = arith.constant 0 : i32
    %c0_i32_1 = arith.constant 0 : i32
    return %c0_i32, %c0_i32_0 : i32, i32
  }
  func.func @transform_2(%arg0: i32) -> (i32, i32) {
    %c0_i32 = arith.constant 0 : i32
    %c0_i32_0 = arith.constant 0 : i32
    %c0_i32_1 = arith.constant 0 : i32
    return %c0_i32, %c0_i32_0 : i32, i32
  }
  func.func @transform_3(%arg0: i32) -> (i32, i32) {
    %c0_i32 = arith.constant 0 : i32
    %c0_i32_0 = arith.constant 0 : i32
    %c0_i32_1 = arith.constant 0 : i32
    return %c0_i32, %c0_i32_0 : i32, i32
  }
  func.func @transform_4(%arg0: i32) -> (i32, i32) {
    %c0_i32 = arith.constant 0 : i32
    %c0_i32_0 = arith.constant 0 : i32
    %c0_i32_1 = arith.constant 0 : i32
    return %c0_i32, %c0_i32_0 : i32, i32
  }
  func.func @transform_5(%arg0: i32) -> (i32, i32) {
    %c0_i32 = arith.constant 0 : i32
    %c0_i32_0 = arith.constant 0 : i32
    %c0_i32_1 = arith.constant 0 : i32
    return %c0_i32, %c0_i32_0 : i32, i32
  }
  func.func @transform_6(%arg0: i32) -> (i32, i32) {
    %c0_i32 = arith.constant 0 : i32
    %c0_i32_0 = arith.constant 0 : i32
    %c0_i32_1 = arith.constant 0 : i32
    return %c0_i32, %c0_i32_0 : i32, i32
  }
  func.func @transform_7(%arg0: i32) -> (i32, i32) {
    %c0_i32 = arith.constant 0 : i32
    %c0_i32_0 = arith.constant 0 : i32
    return %arg0, %c0_i32 : i32, i32
  }
}

</mosaic_0001>

<bundles_post_ra>
// kernel: d_forward.1
= control target key start
LH: loop header
LB: loop body
LE: loop exit
PB: predicated region body
PF: predicated region fallthrough
CT: control target
= control target key end

     0   :  { %13 = vsyncpa [#allocation4], 0  ;;  %s1684_s0 = inlined_call_operand.vmem [shape: bf16[2,512], index: 0, kind: input, shape index: {}]   ;;  %s1685_s1 = inlined_call_operand.hbm [shape: bf16[512,256], index: 1, kind: input, shape index: {}]   ;;  %s1686_s2 = inlined_call_operand.vmem [shape: f32[1,256], index: 2, kind: input, shape index: {}]   ;;  %s1687_s3 = inlined_call_operand.vmem [shape: bf16[256,256], index: 3, kind: input, shape index: {}]   ;;  %s1688_s4 = inlined_call_operand.vmem [shape: f32[1,256], index: 4, kind: input, shape index: {}]   ;;  %s1689_s5 = inlined_call_operand.vmem [shape: bf16[1,256], index: 5, kind: input, shape index: {}]   ;;  %s1690_s6 = inlined_call_operand.<no memory space> [shape: f32[1,1], index: 6, kind: input, shape index: {}]   ;;  %s1691_s7 = inlined_call_operand.hbm [shape: f32[1,2], index: 7, kind: output, shape index: {}]  }
   0x1   :  { %14 = vsyncpa [#allocation5], 0  ;;  %s21_s26 = sshll.u32 %s1685_s1, 4  ;;  %s1411_s27 = smov [#allocation3]   ;;  %s22_s26 = int_to_ptr.hbm [resolvable:$true] %s21_s26 }
   0x2   :  { %s23_s28 = sshll.u32 %s1411_s27, 4  ;;  %s1412_s29 = smov 128   ;;  %s24_s28 = int_to_ptr.vmem [resolvable:$true] %s23_s28 }
   0x3   :  { %s1413_s30 = smov 8  }
   0x4   :  { %29 = dma.hbm_to_vmem [thread:$0]  %s22_s26, 8192, %s24_s28, [#allocation4], %s1412_s29, %s1412_s29, %s1413_s30  }
   0x5   :  { %1407 = dma.done.wait [#allocation4], 8192  }
   0x6   :  { %1408 = vsyncadd [#allocation4], 4294959104  ;;  %v929_v0 = vld [vmem:[#allocation3 + $0x70] sm:$0xf]  ;;  %v1270_v1 = vld [vmem:[#allocation3 + $0x74] sm:$0xf0] }
   0x7   :  { %v993_v2 = vld [vmem:[#allocation3 + $0xf0] sm:$0xf]  ;;  %v930_v3 = vor.u32 %v1270_v1, %v929_v0  ;;  %v1286_v4 = vld [vmem:[#allocation3 + $0xf4] sm:$0xf0]  ;;  %v921_v11 = vld [vmem:[#allocation3 + $0x60] sm:$0xf] }
   0x8   :  { %v1057_v5 = vld [vmem:[#allocation3 + $0x170] sm:$0xf]  ;;  %v1302_v6 = vld [vmem:[#allocation3 + $0x174] sm:$0xf0]  ;;  %v994_v7 = vor.u32 %v1286_v4, %v993_v2  ;;  %v1268_v13 = vld [vmem:[#allocation3 + $0x64] sm:$0xf0] }
   0x9   :  { %v1058_v8 = vor.u32 %v1302_v6, %v1057_v5  ;;  %v1121_v9 = vld [vmem:[#allocation3 + $0x1f0] sm:$0xf]  ;;  %v1318_v10 = vld [vmem:[#allocation3 + $0x1f4] sm:$0xf0]  ;;  %446 = vmatpush.bf16.msra.mxu0 %v930_v3  ;;  %v985_v14 = vld [vmem:[#allocation3 + $0xe0] sm:$0xf]  ;;  %v922_v16 = vor.u32 %v1268_v13, %v921_v11 }
   0xa   :  { %v1122_v12 = vor.u32 %v1318_v10, %v1121_v9  ;;  %v1284_v15 = vld [vmem:[#allocation3 + $0xe4] sm:$0xf0]  ;;  %459 = vmatpush.bf16.msra.mxu1 %v994_v7  ;;  %v1049_v18 = vld [vmem:[#allocation3 + $0x160] sm:$0xf]  ;;  %v913_v23 = vld [vmem:[#allocation3 + $0x50] sm:$0xf] }
   0xb   :  { %472 = vmatpush.bf16.msra.mxu2 %v1058_v8  ;;  %v986_v17 = vor.u32 %v1284_v15, %v985_v14  ;;  %v1300_v19 = vld [vmem:[#allocation3 + $0x164] sm:$0xf0]  ;;  %v1113_v20 = vld [vmem:[#allocation3 + $0x1e0] sm:$0xf]  ;;  %v1266_v24 = vld [vmem:[#allocation3 + $0x54] sm:$0xf0] }
   0xc   :  { %485 = vmatpush.bf16.msra.mxu3 %v1122_v12  ;;  %v1050_v21 = vor.u32 %v1300_v19, %v1049_v18  ;;  %v1316_v22 = vld [vmem:[#allocation3 + $0x1e4] sm:$0xf0]  ;;  %v977_v26 = vld [vmem:[#allocation3 + $0xd0] sm:$0xf]  ;;  %v1282_v27 = vld [vmem:[#allocation3 + $0xd4] sm:$0xf0]  ;;  %v914_v29 = vor.u32 %v1266_v24, %v913_v23 }
   0xd   :  { %v1114_v25 = vor.u32 %v1316_v22, %v1113_v20  ;;  %v1041_v28 = vld [vmem:[#allocation3 + $0x150] sm:$0xf]  ;;  %447 = vmatpush.bf16.msra.mxu0 %v922_v16  ;;  %v1298_v30 = vld [vmem:[#allocation3 + $0x154] sm:$0xf0]  ;;  %v978_v33 = vor.u32 %v1282_v27, %v977_v26  ;;  %v905_v35 = vld [vmem:[#allocation3 + $0x40] sm:$0xf] }
   0xe   :  { %v1105_v31 = vld [vmem:[#allocation3 + $0x1d0] sm:$0xf]  ;;  %v1314_v32 = vld [vmem:[#allocation3 + $0x1d4] sm:$0xf0]  ;;  %460 = vmatpush.bf16.msra.mxu1 %v986_v17  ;;  %v1042_v34 = vor.u32 %v1298_v30, %v1041_v28  ;;  %v1264_v36 = vld [vmem:[#allocation3 + $0x44] sm:$0xf0] }
   0xf   :  { %473 = vmatpush.bf16.msra.mxu2 %v1050_v21  ;;  %v969_v37 = vld [vmem:[#allocation3 + $0xc0] sm:$0xf]  ;;  %v1106_v38 = vor.u32 %v1314_v32, %v1105_v31  ;;  %v1280_v39 = vld [vmem:[#allocation3 + $0xc4] sm:$0xf0]  ;;  %v906_v44 = vor.u32 %v1264_v36, %v905_v35  ;;  %v897_v47 = vld [vmem:[#allocation3 + $0x30] sm:$0xf] }
  0x10   :  { %486 = vmatpush.bf16.msra.mxu3 %v1114_v25  ;;  %v1033_v40 = vld [vmem:[#allocation3 + $0x140] sm:$0xf]  ;;  %v1296_v41 = vld [vmem:[#allocation3 + $0x144] sm:$0xf0]  ;;  %v970_v45 = vor.u32 %v1280_v39, %v969_v37  ;;  %v1262_v48 = vld [vmem:[#allocation3 + $0x34] sm:$0xf0] }
  0x11   :  { %v1097_v42 = vld [vmem:[#allocation3 + $0x1c0] sm:$0xf]  ;;  %v1312_v43 = vld [vmem:[#allocation3 + $0x1c4] sm:$0xf0]  ;;  %448 = vmatpush.bf16.msra.mxu0 %v914_v29  ;;  %v1034_v46 = vor.u32 %v1296_v41, %v1033_v40  ;;  %v961_v49 = vld [vmem:[#allocation3 + $0xb0] sm:$0xf]  ;;  %v898_v56 = vor.u32 %v1262_v48, %v897_v47 }
  0x12   :  { %461 = vmatpush.bf16.msra.mxu1 %v978_v33  ;;  %v1098_v50 = vor.u32 %v1312_v43, %v1097_v42  ;;  %v1278_v51 = vld [vmem:[#allocation3 + $0xb4] sm:$0xf0]  ;;  %v1025_v52 = vld [vmem:[#allocation3 + $0x130] sm:$0xf]  ;;  %v889_v59 = vld [vmem:[#allocation3 + $0x20] sm:$0xf] }
  0x13   :  { %474 = vmatpush.bf16.msra.mxu2 %v1042_v34  ;;  %v1294_v53 = vld [vmem:[#allocation3 + $0x134] sm:$0xf0]  ;;  %v1089_v54 = vld [vmem:[#allocation3 + $0x1b0] sm:$0xf]  ;;  %v962_v57 = vor.u32 %v1278_v51, %v961_v49  ;;  %v1260_v60 = vld [vmem:[#allocation3 + $0x24] sm:$0xf0] }
  0x14   :  { %487 = vmatpush.bf16.msra.mxu3 %v1106_v38  ;;  %v1310_v55 = vld [vmem:[#allocation3 + $0x1b4] sm:$0xf0]  ;;  %v1026_v58 = vor.u32 %v1294_v53, %v1025_v52  ;;  %v953_v61 = vld [vmem:[#allocation3 + $0xa0] sm:$0xf]  ;;  %v1276_v63 = vld [vmem:[#allocation3 + $0xa4] sm:$0xf0]  ;;  %v890_v4 = vor.u32 %v1260_v60, %v889_v59 }
  0x15   :  { %449 = vmatpush.bf16.msra.mxu0 %v906_v44  ;;  %v1090_v62 = vor.u32 %v1310_v55, %v1089_v54  ;;  %v1017_v0 = vld [vmem:[#allocation3 + $0x120] sm:$0xf]  ;;  %v1292_v1 = vld [vmem:[#allocation3 + $0x124] sm:$0xf0]  ;;  %v954_v5 = vor.u32 %v1276_v63, %v953_v61  ;;  %v881_v7 = vld [vmem:[#allocation3 + $0x10] sm:$0xf] }
  0x16   :  { %462 = vmatpush.bf16.msra.mxu1 %v970_v45  ;;  %v1081_v2 = vld [vmem:[#allocation3 + $0x1a0] sm:$0xf]  ;;  %v1308_v3 = vld [vmem:[#allocation3 + $0x1a4] sm:$0xf0]  ;;  %v1018_v6 = vor.u32 %v1292_v1, %v1017_v0  ;;  %v1258_v8 = vld [vmem:[#allocation3 + $0x14] sm:$0xf0] }
  0x17   :  { %475 = vmatpush.bf16.msra.mxu2 %v1034_v46  ;;  %v945_v9 = vld [vmem:[#allocation3 + $0x90] sm:$0xf]  ;;  %v1082_v10 = vor.u32 %v1308_v3, %v1081_v2  ;;  %v1274_v11 = vld [vmem:[#allocation3 + $0x94] sm:$0xf0]  ;;  %v873_v16 = vld [vmem:[#allocation3] sm:$0xf]  ;;  %v882_v17 = vor.u32 %v1258_v8, %v881_v7 }
  0x18   :  { %488 = vmatpush.bf16.msra.mxu3 %v1098_v50  ;;  %v1009_v12 = vld [vmem:[#allocation3 + $0x110] sm:$0xf]  ;;  %v1290_v13 = vld [vmem:[#allocation3 + $0x114] sm:$0xf0]  ;;  %v1256_v18 = vld [vmem:[#allocation3 + $0x4] sm:$0xf0]  ;;  %v946_v21 = vor.u32 %v1274_v11, %v945_v9 }
  0x19   :  { %450 = vmatpush.bf16.msra.mxu0 %v898_v56  ;;  %v1073_v14 = vld [vmem:[#allocation3 + $0x190] sm:$0xf]  ;;  %v1306_v15 = vld [vmem:[#allocation3 + $0x194] sm:$0xf0]  ;;  %v937_v19 = vld [vmem:[#allocation3 + $0x80] sm:$0xf]  ;;  %v1010_v22 = vor.u32 %v1290_v13, %v1009_v12  ;;  %v874_v33 = vor.u32 %v1256_v18, %v873_v16 }
  0x1a   :  { %463 = vmatpush.bf16.msra.mxu1 %v962_v57  ;;  %v1272_v20 = vld [vmem:[#allocation3 + $0x84] sm:$0xf0]  ;;  %v1001_v23 = vld [vmem:[#allocation3 + $0x100] sm:$0xf]  ;;  %v1074_v26 = vor.u32 %v1306_v15, %v1073_v14  ;;  %v1269_v28 = vld [vmem:[#allocation3 + $0x74] sm:$0xf] }
  0x1b   :  { %476 = vmatpush.bf16.msra.mxu2 %v1026_v58  ;;  %v1288_v24 = vld [vmem:[#allocation3 + $0x104] sm:$0xf0]  ;;  %v1065_v25 = vld [vmem:[#allocation3 + $0x180] sm:$0xf]  ;;  %v931_v29 = vld [vmem:[#allocation3 + $0x78] sm:$0xf0]  ;;  %v938_v36 = vor.u32 %v1272_v20, %v937_v19 }
  0x1c   :  { %489 = vmatpush.bf16.msra.mxu3 %v1090_v62  ;;  %v1304_v27 = vld [vmem:[#allocation3 + $0x184] sm:$0xf0]  ;;  %v1285_v30 = vld [vmem:[#allocation3 + $0xf4] sm:$0xf]  ;;  %v995_v31 = vld [vmem:[#allocation3 + $0xf8] sm:$0xf0]  ;;  %v1002_v37 = vor.u32 %v1288_v24, %v1001_v23  ;;  %v934_v41 = vor.u32 %v1269_v28, %v931_v29 }
  0x1d   :  { %451 = vmatpush.bf16.msra.mxu0 %v890_v4  ;;  %v45_v32 = vld [vmem:[%s1684_s0] sm:$0xf]  ;;  %v1301_v34 = vld [vmem:[#allocation3 + $0x174] sm:$0xf]  ;;  %v1059_v35 = vld [vmem:[#allocation3 + $0x178] sm:$0xf0]  ;;  %v1066_v40 = vor.u32 %v1304_v27, %v1065_v25  ;;  %v998_v43 = vor.u32 %v1285_v30, %v995_v31 }
  0x1e   :  { %464 = vmatpush.bf16.msra.mxu1 %v954_v5  ;;  %117 = vst [vmem:[#allocation1] ss:$9 sm:$0xff] %v45_v32  ;;  %v1317_v38 = vld [vmem:[#allocation3 + $0x1f4] sm:$0xf]  ;;  %v1123_v39 = vld [vmem:[#allocation3 + $0x1f8] sm:$0xf0]  ;;  %v1062_v44 = vor.u32 %v1301_v34, %v1059_v35 }
  0x1f   :  { %477 = vmatpush.bf16.msra.mxu2 %v1018_v6  ;;  %v1267_v42 = vld [vmem:[#allocation3 + $0x64] sm:$0xf]  ;;  %v923_v45 = vld [vmem:[#allocation3 + $0x68] sm:$0xf0]  ;;  %v1126_v48 = vor.u32 %v1317_v38, %v1123_v39  ;;  %v1265_v53 = vld [vmem:[#allocation3 + $0x54] sm:$0xf] }
  0x20   :  { %490 = vmatpush.bf16.msra.mxu3 %v1082_v10  ;;  %v1283_v46 = vld [vmem:[#allocation3 + $0xe4] sm:$0xf]  ;;  %v987_v47 = vld [vmem:[#allocation3 + $0xe8] sm:$0xf0]  ;;  %v915_v54 = vld [vmem:[#allocation3 + $0x58] sm:$0xf0]  ;;  %v926_v55 = vor.u32 %v1267_v42, %v923_v45 }
  0x21   :  { %452 = vmatpush.bf16.msra.mxu0 %v882_v17  ;;  %v1299_v49 = vld [vmem:[#allocation3 + $0x164] sm:$0xf]  ;;  %v1051_v50 = vld [vmem:[#allocation3 + $0x168] sm:$0xf0]  ;;  %v1281_v56 = vld [vmem:[#allocation3 + $0xd4] sm:$0xf]  ;;  %v990_v59 = vor.u32 %v1283_v46, %v987_v47  ;;  %v918_v6 = vor.u32 %v1265_v53, %v915_v54 }
  0x22   :  { %465 = vmatpush.bf16.msra.mxu1 %v946_v21  ;;  %v1315_v51 = vld [vmem:[#allocation3 + $0x1e4] sm:$0xf]  ;;  %v1115_v52 = vld [vmem:[#allocation3 + $0x1e8] sm:$0xf0]  ;;  %v979_v57 = vld [vmem:[#allocation3 + $0xd8] sm:$0xf0]  ;;  %v1054_v60 = vor.u32 %v1299_v49, %v1051_v50 }
  0x23   :  { %478 = vmatpush.bf16.msra.mxu2 %v1010_v22  ;;  %v810_v58 = vld [vmem:[%s1689_s5] sm:$0x3]  ;;  %v1118_v0 = vor.u32 %v1315_v51, %v1115_v52  ;;  %v1297_v1 = vld [vmem:[#allocation3 + $0x154] sm:$0xf]  ;;  %v1043_v2 = vld [vmem:[#allocation3 + $0x158] sm:$0xf0]  ;;  %v982_v7 = vor.u32 %v1281_v56, %v979_v57 }
  0x24   :  { %491 = vmatpush.bf16.msra.mxu3 %v1074_v26  ;;  %v1313_v4 = vld [vmem:[#allocation3 + $0x1d4] sm:$0xf]  ;;  %v1107_v5 = vld [vmem:[#allocation3 + $0x1d8] sm:$0xf0]  ;;  %v1046_v8 = vor.u32 %v1297_v1, %v1043_v2  ;;  %v1263_v9 = vld [vmem:[#allocation3 + $0x44] sm:$0xf] }
  0x25   :  { %453 = vmatpush.bf16.msra.mxu0 %v874_v33  ;;  %v1464_v61 = vld [vmem:[#allocation1 + $0x12] sm:$0xff]  ;;  %v1466_v62 = vld [vmem:[#allocation1] sm:$0xff]  ;;  %v1471_v3 = vld [vmem:[#allocation1 + $0x9] sm:$0xff]  ;;  %v1110_v12 = vor.u32 %v1313_v4, %v1107_v5  ;;  %s861_s13 = sshll.u32 %s1691_s7, 4  ;;  %vm852_vm0 = vcmask 8192   ;;  %s862_s13 = int_to_ptr.hbm [resolvable:$true] %s861_s13 }
  0x26   :  { %466 = vmatpush.bf16.msra.mxu1 %v938_v36  ;;  %v1468_v63 = vld [vmem:[#allocation1 + $0x1b] sm:$0xff]  ;;  %v907_v10 = vld [vmem:[#allocation3 + $0x48] sm:$0xf0]  ;;  %v1279_v11 = vld [vmem:[#allocation3 + $0xc4] sm:$0xf] }
  0x27   :  { %479 = vmatpush.bf16.msra.mxu2 %v1002_v37  ;;  %816 = vst [vmem:[#allocation1] ss:$9 sm:$0xff] %v810_v58  ;;  %v971_v13 = vld [vmem:[#allocation3 + $0xc8] sm:$0xf0]  ;;  %v1295_v14 = vld [vmem:[#allocation3 + $0x144] sm:$0xf]  ;;  %v910_v18 = vor.u32 %v1263_v9, %v907_v10 }
  0x28   :  { %492 = vmatpush.bf16.msra.mxu3 %v1066_v40  ;;  %454 = vmatmul.bf16.vlgmr.msra.gmra.mxu0 %v1466_v62  ;;  %v1035_v15 = vld [vmem:[#allocation3 + $0x148] sm:$0xf0]  ;;  %v1311_v16 = vld [vmem:[#allocation3 + $0x1c4] sm:$0xf]  ;;  %v974_v19 = vor.u32 %v1279_v11, %v971_v13  ;;  %v1261_v21 = vld [vmem:[#allocation3 + $0x34] sm:$0xf] }
  0x29   :  { %498 = vmatpush.bf16.msrb.mxu0 %v934_v41  ;;  %467 = vmatmul.bf16.vlgmr.msra.gmra.mxu1 %v1471_v3  ;;  %v1099_v17 = vld [vmem:[#allocation3 + $0x1c8] sm:$0xf0]  ;;  %v1038_v20 = vor.u32 %v1295_v14, %v1035_v15  ;;  %v899_v22 = vld [vmem:[#allocation3 + $0x38] sm:$0xf0]  ;;  %v1277_v23 = vld [vmem:[#allocation3 + $0xb4] sm:$0xf] }
  0x2a   :  { %511 = vmatpush.bf16.msrb.mxu1 %v998_v43  ;;  %480 = vmatmul.bf16.vlgmr.msra.gmra.mxu2 %v1464_v61  ;;  %v1102_v24 = vor.u32 %v1311_v16, %v1099_v17  ;;  %v963_v25 = vld [vmem:[#allocation3 + $0xb8] sm:$0xf0]  ;;  %v1293_v26 = vld [vmem:[#allocation3 + $0x134] sm:$0xf]  ;;  %v902_v30 = vor.u32 %v1261_v21, %v899_v22  ;;  %v1259_v33 = vld [vmem:[#allocation3 + $0x24] sm:$0xf] }
  0x2b   :  { %524 = vmatpush.bf16.msrb.mxu2 %v1062_v44  ;;  %493 = vmatmul.bf16.vlgmr.msra.gmra.mxu3 %v1468_v63  ;;  %v1027_v27 = vld [vmem:[#allocation3 + $0x138] sm:$0xf0]  ;;  %v1309_v28 = vld [vmem:[#allocation3 + $0x1b4] sm:$0xf]  ;;  %v966_v31 = vor.u32 %v1277_v23, %v963_v25  ;;  %v891_v34 = vld [vmem:[#allocation3 + $0x28] sm:$0xf0] }
  0x2c   :  { %537 = vmatpush.bf16.msrb.mxu3 %v1126_v48  ;;  %v1091_v29 = vld [vmem:[#allocation3 + $0x1b8] sm:$0xf0]  ;;  %v1030_v32 = vor.u32 %v1293_v26, %v1027_v27  ;;  %v1275_v35 = vld [vmem:[#allocation3 + $0xa4] sm:$0xf]  ;;  %v955_v37 = vld [vmem:[#allocation3 + $0xa8] sm:$0xf0]  ;;  %v894_v42 = vor.u32 %v1259_v33, %v891_v34 }
  0x2d   :  { %499 = vmatpush.bf16.msrb.mxu0 %v926_v55  ;;  %v1094_v36 = vor.u32 %v1309_v28, %v1091_v29  ;;  %v1291_v38 = vld [vmem:[#allocation3 + $0x124] sm:$0xf]  ;;  %v1019_v39 = vld [vmem:[#allocation3 + $0x128] sm:$0xf0]  ;;  %v958_v43 = vor.u32 %v1275_v35, %v955_v37  ;;  %v1257_v45 = vld [vmem:[#allocation3 + $0x14] sm:$0xf] }
  0x2e   :  { %512 = vmatpush.bf16.msrb.mxu1 %v990_v59  ;;  %v1307_v40 = vld [vmem:[#allocation3 + $0x1a4] sm:$0xf]  ;;  %v1083_v41 = vld [vmem:[#allocation3 + $0x1a8] sm:$0xf0]  ;;  %v1022_v44 = vor.u32 %v1291_v38, %v1019_v39  ;;  %v883_v46 = vld [vmem:[#allocation3 + $0x18] sm:$0xf0] }
  0x2f   :  { %525 = vmatpush.bf16.msrb.mxu2 %v1054_v60  ;;  %v1273_v47 = vld [vmem:[#allocation3 + $0x94] sm:$0xf]  ;;  %v1086_v48 = vor.u32 %v1307_v40, %v1083_v41  ;;  %v947_v49 = vld [vmem:[#allocation3 + $0x98] sm:$0xf0]  ;;  %v886_v54 = vor.u32 %v1257_v45, %v883_v46  ;;  %v1255_v55 = vld [vmem:[#allocation3 + $0x4] sm:$0xf] }
  0x30   :  { %538 = vmatpush.bf16.msrb.mxu3 %v1118_v0  ;;  %v1289_v50 = vld [vmem:[#allocation3 + $0x114] sm:$0xf]  ;;  %v1011_v51 = vld [vmem:[#allocation3 + $0x118] sm:$0xf0]  ;;  %v950_v56 = vor.u32 %v1273_v47, %v947_v49  ;;  %v875_v58 = vld [vmem:[#allocation3 + $0x8] sm:$0xf0] }
  0x31   :  { %500 = vmatpush.bf16.msrb.mxu0 %v918_v6  ;;  %v1305_v52 = vld [vmem:[#allocation3 + $0x194] sm:$0xf]  ;;  %v1075_v53 = vld [vmem:[#allocation3 + $0x198] sm:$0xf0]  ;;  %v1014_v57 = vor.u32 %v1289_v50, %v1011_v51  ;;  %v1271_v59 = vld [vmem:[#allocation3 + $0x84] sm:$0xf] }
  0x32   :  { %513 = vmatpush.bf16.msrb.mxu1 %v982_v7  ;;  %v939_v60 = vld [vmem:[#allocation3 + $0x88] sm:$0xf0]  ;;  %v1078_v0 = vor.u32 %v1305_v52, %v1075_v53  ;;  %v1287_v1 = vld [vmem:[#allocation3 + $0x104] sm:$0xf]  ;;  %v1185_v6 = vld [vmem:[%s1687_s3 + $0x70] sm:$0xf] }
  0x33   :  { %526 = vmatpush.bf16.msrb.mxu2 %v1046_v8  ;;  %v1003_v2 = vld [vmem:[#allocation3 + $0x108] sm:$0xf0]  ;;  %v1303_v4 = vld [vmem:[#allocation3 + $0x184] sm:$0xf]  ;;  %v1334_v7 = vld [vmem:[%s1687_s3 + $0x74] sm:$0xf0]  ;;  %v878_v8 = vor.u32 %v1255_v55, %v875_v58  ;;  %v942_v11 = vor.u32 %v1271_v59, %v939_v60 }
  0x34   :  { %539 = vmatpush.bf16.msrb.mxu3 %v1110_v12  ;;  %v1067_v5 = vld [vmem:[#allocation3 + $0x188] sm:$0xf0]  ;;  %v1187_v10 = vld [vmem:[%s1687_s3 + $0x78] sm:$0xf0]  ;;  %v1006_v12 = vor.u32 %v1287_v1, %v1003_v2  ;;  %v1186_v14 = vor.u32 %v1334_v7, %v1185_v6  ;;  %v1177_v16 = vld [vmem:[%s1687_s3 + $0x60] sm:$0xf] }
  0x35   :  { %501 = vmatpush.bf16.msrb.mxu0 %v910_v18  ;;  %v1333_v9 = vld [vmem:[%s1687_s3 + $0x74] sm:$0xf]  ;;  %v1070_v13 = vor.u32 %v1303_v4, %v1067_v5  ;;  %v1332_v17 = vld [vmem:[%s1687_s3 + $0x64] sm:$0xf0]  ;;  %v1331_v18 = vld [vmem:[%s1687_s3 + $0x64] sm:$0xf] }
  0x36   :  { %514 = vmatpush.bf16.msrb.mxu1 %v974_v19  ;;  %v1190_v15 = vor.u32 %v1333_v9, %v1187_v10  ;;  %v1179_v19 = vld [vmem:[%s1687_s3 + $0x68] sm:$0xf0]  ;;  %v1169_v22 = vld [vmem:[%s1687_s3 + $0x50] sm:$0xf]  ;;  %v1330_v23 = vld [vmem:[%s1687_s3 + $0x54] sm:$0xf0] }
  0x37   :  { %527 = vmatpush.bf16.msrb.mxu2 %v1038_v20  ;;  %v1178_v20 = vor.u32 %v1332_v17, %v1177_v16  ;;  %v1182_v21 = vor.u32 %v1331_v18, %v1179_v19  ;;  %v1170_v25 = vor.u32 %v1330_v23, %v1169_v22  ;;  %v1327_v27 = vld [vmem:[%s1687_s3 + $0x44] sm:$0xf]  ;;  %v1155_v34 = vld [vmem:[%s1687_s3 + $0x38] sm:$0xf0]  ;;  %v1324_v37 = vld [vmem:[%s1687_s3 + $0x24] sm:$0xf0] }
  0x38   :  { %540 = vmatpush.bf16.msrb.mxu3 %v1102_v24  ;;  %v1329_v24 = vld [vmem:[%s1687_s3 + $0x54] sm:$0xf]  ;;  %v1323_v38 = vld [vmem:[%s1687_s3 + $0x24] sm:$0xf]  ;;  %v1147_v40 = vld [vmem:[%s1687_s3 + $0x28] sm:$0xf0] }
  0x39   :  { %502 = vmatpush.bf16.msrb.mxu0 %v902_v30  ;;  %v1153_v30 = vld [vmem:[%s1687_s3 + $0x30] sm:$0xf]  ;;  %v1150_v41 = vor.u32 %v1323_v38, %v1147_v40  ;;  %v1139_v46 = vld [vmem:[%s1687_s3 + $0x18] sm:$0xf0]  ;;  %v1350_v49 = vld [vmem:[%s1687_s3 + $0xf4] sm:$0xf0] }
  0x3a   :  { %515 = vmatpush.bf16.msrb.mxu1 %v966_v31  ;;  %v1326_v31 = vld [vmem:[%s1687_s3 + $0x34] sm:$0xf0]  ;;  %v1349_v50 = vld [vmem:[%s1687_s3 + $0xf4] sm:$0xf]  ;;  %v1251_v52 = vld [vmem:[%s1687_s3 + $0xf8] sm:$0xf0] }
  0x3b   :  { %528 = vmatpush.bf16.msrb.mxu2 %v1030_v32  ;;  %v1325_v32 = vld [vmem:[%s1687_s3 + $0x34] sm:$0xf]  ;;  %v1154_v33 = vor.u32 %v1326_v31, %v1153_v30  ;;  %v1129_v53 = vld [vmem:[%s1687_s3] sm:$0xf]  ;;  %v1254_v55 = vor.u32 %v1349_v50, %v1251_v52  ;;  %v1131_v58 = vld [vmem:[%s1687_s3 + $0x8] sm:$0xf0] }
  0x3c   :  { %541 = vmatpush.bf16.msrb.mxu3 %v1094_v36  ;;  %v1158_v35 = vor.u32 %v1325_v32, %v1155_v34  ;;  %v1145_v36 = vld [vmem:[%s1687_s3 + $0x20] sm:$0xf]  ;;  %v1347_v1 = vld [vmem:[%s1687_s3 + $0xe4] sm:$0xf]  ;;  %v1243_v2 = vld [vmem:[%s1687_s3 + $0xe8] sm:$0xf0] }
  0x3d   :  { %503 = vmatpush.bf16.msrb.mxu0 %v894_v42  ;;  %v1146_v39 = vor.u32 %v1324_v37, %v1145_v36  ;;  %v1137_v42 = vld [vmem:[%s1687_s3 + $0x10] sm:$0xf]  ;;  %v1241_v59 = vld [vmem:[%s1687_s3 + $0xe0] sm:$0xf]  ;;  %v1246_v5 = vor.u32 %v1347_v1, %v1243_v2  ;;  %v1346_v7 = vld [vmem:[%s1687_s3 + $0xd4] sm:$0xf0] }
  0x3e   :  { %516 = vmatpush.bf16.msrb.mxu1 %v958_v43  ;;  %v1322_v43 = vld [vmem:[%s1687_s3 + $0x14] sm:$0xf0]  ;;  %v1233_v6 = vld [vmem:[%s1687_s3 + $0xd0] sm:$0xf]  ;;  %v1235_v9 = vld [vmem:[%s1687_s3 + $0xd8] sm:$0xf0] }
  0x3f   :  { %529 = vmatpush.bf16.msrb.mxu2 %v1022_v44  ;;  %v1321_v44 = vld [vmem:[%s1687_s3 + $0x14] sm:$0xf]  ;;  %v1138_v45 = vor.u32 %v1322_v43, %v1137_v42  ;;  %v1234_v10 = vor.u32 %v1346_v7, %v1233_v6  ;;  %v110_v17 = vld [vmem:[%s1686_s2] sm:$0x3]  ;;  %v1338_v34 = vld [vmem:[%s1687_s3 + $0x94] sm:$0xf0] }
  0x40   :  { %542 = vmatpush.bf16.msrb.mxu3 %v1086_v48  ;;  %v1142_v47 = vor.u32 %v1321_v44, %v1139_v46  ;;  %v1249_v48 = vld [vmem:[%s1687_s3 + $0xf0] sm:$0xf]  ;;  %v112_v19 = vperm.slane %v110_v17, 0  ;;  %v1341_v22 = vld [vmem:[%s1687_s3 + $0xb4] sm:$0xf]  ;;  %s1414_s2 = smov [#allocation6]  }
  0x41   :  { %504 = vmatpush.bf16.msrb.mxu0 %v886_v54  ;;  %v1250_v51 = vor.u32 %v1350_v49, %v1249_v48  ;;  %v1320_v54 = vld [vmem:[%s1687_s3 + $0x4] sm:$0xf0]  ;;  %v1193_v44 = vld [vmem:[%s1687_s3 + $0x80] sm:$0xf]  ;;  %v1335_v46 = vld [vmem:[%s1687_s3 + $0x84] sm:$0xf] }
  0x42   :  { %517 = vmatpush.bf16.msrb.mxu1 %v950_v56  ;;  %v1130_v56 = vor.u32 %v1320_v54, %v1129_v53  ;;  %v1195_v49 = vld [vmem:[%s1687_s3 + $0x88] sm:$0xf0]  ;;  %s859_s10 = sshll.u32 %s1414_s2, 4  ;;  %s860_s10 = int_to_ptr.vmem [resolvable:$true] %s859_s10 }
  0x43   :  { %530 = vmatpush.bf16.msrb.mxu2 %v1014_v57  ;;  %v1319_v57 = vld [vmem:[%s1687_s3 + $0x4] sm:$0xf]  ;;  %v1198_v50 = vor.u32 %v1335_v46, %v1195_v49 }
  0x44   :  { %543 = vmatpush.bf16.msrb.mxu3 %v1078_v0  ;;  %v1134_v60 = vor.u32 %v1319_v57, %v1131_v58  ;;  %v1348_v0 = vld [vmem:[%s1687_s3 + $0xe4] sm:$0xf0] }
  0x45   :  { %505 = vmatpush.bf16.msrb.mxu0 %v878_v8  ;;  %v1242_v4 = vor.u32 %v1348_v0, %v1241_v59  ;;  %v1345_v8 = vld [vmem:[%s1687_s3 + $0xd4] sm:$0xf] }
  0x46   :  { %518 = vmatpush.bf16.msrb.mxu1 %v942_v11  ;;  %v1238_v11 = vor.u32 %v1345_v8, %v1235_v9 }
  0x47   :  { %531 = vmatpush.bf16.msrb.mxu2 %v1006_v12  ;;  %v1225_v12 = vld [vmem:[%s1687_s3 + $0xc0] sm:$0xf] }
  0x48   :  { %544 = vmatpush.bf16.msrb.mxu3 %v1070_v13  ;;  %506 = vmatmul.bf16.vlgmr.msrb.gmra.mxu0 %v1466_v62  ;;  %v1171_v62 = vld [vmem:[%s1687_s3 + $0x58] sm:$0xf0]  ;;  %v1344_v13 = vld [vmem:[%s1687_s3 + $0xc4] sm:$0xf0] }
  0x49   :  { %754 = vmatpush.bf16.msra.mxu0 %v1186_v14  ;;  %519 = vmatmul.bf16.vlgmr.msrb.gmra.mxu1 %v1471_v3  ;;  %v1174_v26 = vor.u32 %v1329_v24, %v1171_v62  ;;  %v1161_v3 = vld [vmem:[%s1687_s3 + $0x40] sm:$0xf]  ;;  %v1343_v14 = vld [vmem:[%s1687_s3 + $0xc4] sm:$0xf]  ;;  %v1226_v16 = vor.u32 %v1344_v13, %v1225_v12  ;;  %v1219_v24 = vld [vmem:[%s1687_s3 + $0xb8] sm:$0xf0] }
  0x4a   :  { %532 = vmatmul.bf16.vlgmr.msrb.gmra.mxu2 %v1464_v61  ;;  %v1328_v61 = vld [vmem:[%s1687_s3 + $0x44] sm:$0xf0]  ;;  %767 = vmatpush.bf16.msra.mxu1 %v1250_v51  ;;  %v1222_v62 = vor.u32 %v1341_v22, %v1219_v24 }
  0x4b   :  { %780 = vmatpush.bf16.msra.mxu2 %v1190_v15  ;;  %545 = vmatmul.bf16.vlgmr.msrb.gmra.mxu3 %v1468_v63  ;;  %v1163_v63 = vld [vmem:[%s1687_s3 + $0x48] sm:$0xf0]  ;;  %v1162_v28 = vor.u32 %v1328_v61, %v1161_v3  ;;  %v1209_v61 = vld [vmem:[%s1687_s3 + $0xa0] sm:$0xf] }
  0x4c   :  { %v1166_v29 = vor.u32 %v1327_v27, %v1163_v63  ;;  %793 = vmatpush.bf16.msra.mxu3 %v1254_v55  ;;  %v1227_v15 = vld [vmem:[%s1687_s3 + $0xc8] sm:$0xf0]  ;;  %v1340_v27 = vld [vmem:[%s1687_s3 + $0xa4] sm:$0xf0]  ;;  %v1339_v63 = vld [vmem:[%s1687_s3 + $0xa4] sm:$0xf] }
  0x4d   :  { %755 = vmatpush.bf16.msra.mxu0 %v1178_v20  ;;  %v1230_v18 = vor.u32 %v1343_v14, %v1227_v15  ;;  %v1217_v20 = vld [vmem:[%s1687_s3 + $0xb0] sm:$0xf]  ;;  %v113_v55 = vperm.slane %v110_v17, 1  ;;  %v588_v15 = vld [vmem:[%s1688_s4] sm:$0x3] }
  0x4e   :  { %768 = vmatpush.bf16.msra.mxu1 %v1242_v4 }
  0x4f   :  { %781 = vmatpush.bf16.msra.mxu2 %v1182_v21  ;;  %v1342_v21 = vld [vmem:[%s1687_s3 + $0xb4] sm:$0xf0] }
  0x50   :  { %794 = vmatpush.bf16.msra.mxu3 %v1246_v5  ;;  %v1218_v23 = vor.u32 %v1342_v21, %v1217_v20 }
  0x51   :  { %756 = vmatpush.bf16.msra.mxu0 %v1170_v25 }
  0x52   :  { %769 = vmatpush.bf16.msra.mxu1 %v1234_v10 }
  0x53   :  { %782 = vmatpush.bf16.msra.mxu2 %v1174_v26 }
  0x54   :  { %795 = vmatpush.bf16.msra.mxu3 %v1238_v11 }
  0x55   :  { %757 = vmatpush.bf16.msra.mxu0 %v1162_v28  ;;  %v1210_v28 = vor.u32 %v1340_v27, %v1209_v61 }
  0x56   :  { %770 = vmatpush.bf16.msra.mxu1 %v1226_v16  ;;  %v590_v16 = vperm.slane %v588_v15, 0 }
  0x57   :  { %783 = vmatpush.bf16.msra.mxu2 %v1166_v29  ;;  %v1211_v29 = vld [vmem:[%s1687_s3 + $0xa8] sm:$0xf0] }
  0x58   :  { %796 = vmatpush.bf16.msra.mxu3 %v1230_v18  ;;  %v1214_v31 = vor.u32 %v1339_v63, %v1211_v29  ;;  %v817_v63 = vld [vmem:[#allocation1] sm:$0xff]  ;;  %v818_v29 = vld [vmem:[#allocation1 + $0x9] sm:$0xff] }
  0x59   :  { %758 = vmatpush.bf16.msra.mxu0 %v1154_v33  ;;  %v1201_v33 = vld [vmem:[%s1687_s3 + $0x90] sm:$0xf] }
  0x5a   :  { %771 = vmatpush.bf16.msra.mxu1 %v1218_v23  ;;  %v1202_v38 = vor.u32 %v1338_v34, %v1201_v33 }
  0x5b   :  { %784 = vmatpush.bf16.msra.mxu2 %v1158_v35  ;;  %v1337_v35 = vld [vmem:[%s1687_s3 + $0x94] sm:$0xf] }
  0x5c   :  { %797 = vmatpush.bf16.msra.mxu3 %v1222_v62 }
  0x5d   :  { %759 = vmatpush.bf16.msra.mxu0 %v1146_v39  ;;  %v1203_v39 = vld [vmem:[%s1687_s3 + $0x98] sm:$0xf0] }
  0x5e   :  { %772 = vmatpush.bf16.msra.mxu1 %v1210_v28  ;;  %v1206_v40 = vor.u32 %v1337_v35, %v1203_v39 }
  0x5f   :  { %785 = vmatpush.bf16.msra.mxu2 %v1150_v41 }
  0x60   :  { %798 = vmatpush.bf16.msra.mxu3 %v1214_v31 }
  0x61   :  { %760 = vmatpush.bf16.msra.mxu0 %v1138_v45  ;;  %v1336_v45 = vld [vmem:[%s1687_s3 + $0x84] sm:$0xf0] }
  0x62   :  { %773 = vmatpush.bf16.msra.mxu1 %v1202_v38  ;;  %v1194_v48 = vor.u32 %v1336_v45, %v1193_v44 }
  0x63   :  { %786 = vmatpush.bf16.msra.mxu2 %v1142_v47 }
  0x64   :  { %799 = vmatpush.bf16.msra.mxu3 %v1206_v40 }
  0x65   :  { %761 = vmatpush.bf16.msra.mxu0 %v1130_v56 }
  0x66   :  { %774 = vmatpush.bf16.msra.mxu1 %v1194_v48 }
  0x67   :  { %787 = vmatpush.bf16.msra.mxu2 %v1134_v60 }
  0x68   :  { %800 = vmatpush.bf16.msra.mxu3 %v1198_v50 }
  0xa5   :  { %v455_v25 = vpop.f32.mrf.mxu0 }
  0xa6   :  { %v456_v26 = vadd.f32 %v455_v25, %v112_v19  ;;  %v468_v3 = vpop.f32.mrf.mxu1  ;;  %v591_v19 = vperm.slane %v588_v15, 1 }
  0xa8   :  { %v469_v30 = vadd.f32 %v468_v3, %v456_v26 }
  0xad   :  { %v481_v32 = vpop.f32.mrf.mxu2  ;;  %v457_v42 = vpop.f32.mrf.mxu0 }
  0xae   :  { %v482_v36 = vadd.f32 %v481_v32, %v469_v30  ;;  %v494_v37 = vpop.f32.mrf.mxu3  ;;  %v470_v43 = vpop.f32.mrf.mxu1  ;;  %v814_v30 = vstv %s1690_s6 }
  0xb0   :  { %v495_v41 = vadd.f32 %v494_v37, %v482_v36 }
  0xb2   :  { %v550_v47 = vmul.f32 0.2, %v495_v41 }
  0xb4   :  { %v552_v51 = vmax.f32 %v495_v41, %v550_v47 }
  0xb5   :  { %v483_v52 = vpop.f32.mrf.mxu2 }
  0xb6   :  { %v554_v53 = vpack.c.bf16 %v552_v51, %v552_v51  ;;  %v496_v54 = vpop.f32.mrf.mxu3 }
  0xb8   :  { %762 = vmatmul.bf16.vlgmr.msra.gmra.mxu0 %v554_v53  ;;  %788 = vmatmul.bf16.vlgmr.msra.gmra.mxu2 %v554_v53 }
  0xc5   :  { %v507_v56 = vpop.f32.mrf.mxu0 }
  0xc6   :  { %v508_v57 = vadd.f32 %v507_v56, %v113_v55  ;;  %v520_v58 = vpop.f32.mrf.mxu1 }
  0xc8   :  { %v521_v59 = vadd.f32 %v520_v58, %v508_v57 }
  0xcd   :  { %v533_v60 = vpop.f32.mrf.mxu2  ;;  %v509_v2 = vpop.f32.mrf.mxu0 }
  0xce   :  { %v534_v0 = vadd.f32 %v533_v60, %v521_v59  ;;  %v546_v1 = vpop.f32.mrf.mxu3  ;;  %v522_v4 = vpop.f32.mrf.mxu1 }
  0xd0   :  { %v547_v5 = vadd.f32 %v546_v1, %v534_v0 }
  0xd2   :  { %v551_v6 = vmul.f32 0.2, %v547_v5 }
  0xd4   :  { %v553_v7 = vmax.f32 %v547_v5, %v551_v6 }
  0xd5   :  { %v535_v8 = vpop.f32.mrf.mxu2 }
  0xd6   :  { %v555_v9 = vpack.c.bf16 %v553_v7, %v553_v7  ;;  %v548_v10 = vpop.f32.mrf.mxu3 }
  0xd8   :  { %775 = vmatmul.bf16.vlgmr.msra.gmra.mxu1 %v555_v9  ;;  %801 = vmatmul.bf16.vlgmr.msra.gmra.mxu3 %v555_v9 }
 0x135   :  { %v763_v11 = vpop.f32.mrf.mxu0 }
 0x136   :  { %v764_v17 = vadd.f32 %v763_v11, %v590_v16 }
 0x13b   :  { %v789_v12 = vpop.f32.mrf.mxu2 }
 0x13c   :  { %v790_v22 = vadd.f32 %v789_v12, %v591_v19 }
 0x13d   :  { %v765_v13 = vpop.f32.mrf.mxu0 }
 0x143   :  { %v791_v14 = vpop.f32.mrf.mxu2 }
 0x155   :  { %v776_v18 = vpop.f32.mrf.mxu1 }
 0x156   :  { %v777_v20 = vadd.f32 %v776_v18, %v764_v17 }
 0x158   :  { %v806_v21 = vmul.f32 0.2, %v777_v20 }
 0x15a   :  { %v808_v23 = vmax.f32 %v777_v20, %v806_v21 }
 0x15b   :  { %v802_v24 = vpop.f32.mrf.mxu3 }
 0x15c   :  { %v811_v62 = vpack.c.bf16 %v808_v23, %v808_v23  ;;  %v803_v25 = vadd.f32 %v802_v24, %v790_v22 }
 0x15d   :  { %v778_v26 = vpop.f32.mrf.mxu1 }
 0x15e   :  { %v807_v3 = vmul.f32 0.2, %v803_v25  ;;  %828 = vmatpush.bf16.xpose.msrb.mxu0 %v811_v62 }
 0x160   :  { %v809_v61 = vmax.f32 %v803_v25, %v807_v3 }
 0x162   :  { %v812_v27 = vpack.c.bf16 %v809_v61, %v809_v61 }
 0x163   :  { %v804_v28 = vpop.f32.mrf.mxu3 }
 0x164   :  { %841 = vmatpush.bf16.xpose.msrb.mxu1 %v812_v27 }
 0x165   :  { %829 = vmatmul.bf16.vlgmr.msrb.gmra.mxu0 %v817_v63 }
 0x16b   :  { %842 = vmatmul.bf16.vlgmr.msrb.gmra.mxu1 %v818_v29 }
 0x1e2   :  { %v830_v31 = vpop.f32.mrf.mxu0 }
 0x1e3   :  { %v831_v32 = vadd.f32 %v830_v31, %v814_v30 }
 0x1e8   :  { %v843_v33 = vpop.f32.mrf.mxu1 }
 0x1e9   :  { %v844_v34 = vadd.f32 %v843_v33, %v831_v32 }
 0x1ea   :  { %v832_v35 = vpop.f32.mrf.mxu0 }
 0x1eb   :  { %v847_v36 = vsub.f32 0.0, %v844_v34 }
 0x1ed   :  { %v848_v37 = vmul.f32 1.442695, %v847_v36 }
 0x1ef   :  { %1355 = vpow2.f32 %v848_v37 }
 0x1f0   :  { %v845_v38 = vpop.f32.mrf.mxu1 }
 0x1f5   :  { %v1356_v39 = vpop.eup %1355 }
 0x1f6   :  { %v850_v40 = vadd.f32 1.0, %v1356_v39 }
 0x1f8   :  { %1357 = vrcp.f32 %v850_v40 }
 0x1fe   :  { %v1358_v41 = vpop.eup %1357 }
 0x1ff   :  { %853 = vst.msk [vmem:[#allocation6] sm:$0x1] %vm852_vm0, %v1358_v41 }
 0x200   :  { %864 = dma.vmem_to_hbm [thread:$0]  %s860_s10, 16, %s862_s13, [#allocation5]  }
 0x201   :  { %1409 = dma.done.wait [#allocation5], 16  }
 0x202   :  { %1410 = vsyncadd [#allocation5], 4294967280 }
 0x203   :  { %869 = vsyncpa [#allocation4], 1 }
 0x204   :  { %870 = vsyncpa [#allocation5], 1 }

</bundles_post_ra>
